<compile_context>
chip_gen: v7x
topology: tpu7x:2x2x1
jax: 0.10.0
libtpu: 0.0.40
codegen_flags: <defaults>
</compile_context>

<pallas_src>
import functools
import math

import jax
import jax.numpy as jnp
import numpy as np
from jax.experimental import pallas as pl
from jax.experimental.pallas import tpu as pltpu

LOG_MIN = math.log(0.1)
LOG_MAX = math.log(2.0)
LN_EPS = 1e-5


def _mixture_prior_kernel(h_ref, wcat_ref, bm1_ref, wm2_ref, bm2_ref,
                          offlv_ref, arhs_ref, vo_ref, b2_ref, cc_ref,
                          mix_ref, mu_ref, lv_ref,
                          *, mix_h, c, kc, ph_off, lv_off):
    hb = h_ref[...]                                                    # (TN, D) bf16

    # One fused bf16 MXU matmul over the D contraction produces, side by side:
    #   [:, :mix_h]            mix-net layer-1 pre-activation  h @ Wm1
    #   [:, ph_off:ph_off+c]   mu-net h-projection             h @ W1mu_h
    #   [:, lv_off:lv_off+kc]  logvar h-projection, K-tiled    h @ tile(W1lv_h, K)
    big = jnp.dot(hb, wcat_ref[...], preferred_element_type=jnp.float32)

    # ---- mix_weight_net: SiLU -> Linear(256, Kpad) -> softmax (f32 softmax) ----
    z = big[:, 0:mix_h] + bm1_ref[...]
    z = z * jax.nn.sigmoid(z)                                          # SiLU
    logits = jnp.dot(z.astype(jnp.bfloat16), wm2_ref[...],
                     preferred_element_type=jnp.float32) + bm2_ref[...]
    logits = logits - jnp.max(logits, axis=-1, keepdims=True)          # pad cols ~ -1e30
    e = jnp.exp(logits)                                                # pads underflow to 0
    inv = pl.reciprocal(jnp.sum(e, axis=-1, keepdims=True), approx=True)
    mix_ref[...] = (e * inv).astype(mix_ref.dtype)

    # ---- logvar_net: add per-component code offsets, Hardtanh(log0.1, log2) ----
    lv = big[:, lv_off:lv_off + kc] + offlv_ref[...]
    lv_ref[...] = jnp.clip(lv, LOG_MIN, LOG_MAX).astype(lv_ref.dtype)

    # ---- mu_net with algebraic LayerNorm (no (KC,KC) stats matmuls) ----
    ph = big[:, ph_off:ph_off + c]                                     # (TN, C)
    mh = jnp.mean(ph, axis=-1, keepdims=True)
    a = ph - mh                                                        # centered h-part
    vh = jnp.mean(a * a, axis=-1, keepdims=True)
    # One small bf16 matmul gives both the covariance term and (a*gamma)@W2,
    # already tiled/packed over the K components.
    aw = jnp.dot(a.astype(jnp.bfloat16), arhs_ref[...],
                 preferred_element_type=jnp.float32)                   # (TN, 2*KC)
    q = aw[:, :kc]                   # (2/C) * <a, centered code offset_k>
    a2 = aw[:, kc:]                  # (a * gamma) @ W2, tiled over k
    var = jnp.maximum(vh + vo_ref[...] + q, 0.0)                       # guard tiny negatives
    r = jax.lax.rsqrt(var + LN_EPS)
    mu_pre = r * (a2 + b2_ref[...]) + cc_ref[...]
    # tanh range [-1,1] lies inside the [-3,3] mu_bounds clamp -> clamp dropped.
    mu_ref[...] = jnp.tanh(mu_pre).astype(mu_ref.dtype)


def mixture_confounder_prior_forward(params, h, *, momentum=0.9, row_tile=512):
    """Pallas implementation of MixtureConfounderPrior.forward.

    Returns (mix_weights, mus, logvars, updated_code_emb_momentum).  The updated
    momentum buffer must be persisted by the caller (PyTorch updates it in place).
    """
    is_3d = (h.ndim == 3)
    if is_3d:
        B, T, D = h.shape
    else:
        B, D = h.shape
        T = 1

    K, _ = params["code_embed"].shape
    C = params["w2_mu"].shape[0]
    KC = K * C
    H_MIX = params["wm1"].shape[1]
    K_PAD = max(128, ((K + 127) // 128) * 128)
    C_PAD = ((C + 127) // 128) * 128
    PH_OFF = H_MIX
    LV_OFF = H_MIX + C_PAD

    # Momentum buffer update (no_grad in PyTorch); returned for persistence.
    code_mom = (momentum * params["code_emb_momentum"]
                + (1.0 - momentum) * params["code_embed"]).astype(jnp.float32)

    # -------- grid-invariant precompute (hoisted out of the kernel) --------
    w1_mu, b1_mu = params["w1_mu"], params["b1_mu"]
    w1_lv, b1_lv = params["w1_lv"], params["b1_lv"]
    gamma = params["ln_gamma"].reshape(-1).astype(jnp.float32)
    beta = params["ln_beta"].reshape(-1).astype(jnp.float32)
    w2 = params["w2_mu"].astype(jnp.float32)
    b2 = params["b2_mu"].reshape(-1).astype(jnp.float32)

    # mu first layer split:  pre[n,k,:] = h @ W1mu_h + off_mu[k,:]
    off_mu = (code_mom @ w1_mu[D:, :] + b1_mu).astype(jnp.float32)            # (K, C)
    mo = jnp.mean(off_mu, axis=-1, keepdims=True)
    bcen = off_mu - mo                                                        # centered code part
    vo = jnp.mean(bcen * bcen, axis=-1)                                       # (K,)
    vo_flat = jnp.repeat(vo, C).reshape(1, KC)                                # packed var_code
    b2_flat = ((bcen * gamma[None, :]) @ w2).reshape(1, KC)                   # r * this
    cc_tiled = jnp.tile((beta @ w2 + b2).reshape(1, C), (1, K))               # constant term
    w2g_tiled = jnp.tile(gamma[:, None] * w2, (1, K))                         # (C, KC)
    m2 = (2.0 / C) * jnp.repeat(bcen.T, C, axis=1)                            # (C, KC) cov weights
    a_rhs = jnp.concatenate([m2, w2g_tiled], axis=1).astype(jnp.bfloat16)     # (C, 2*KC)

    # logvar:  pre_lv[n,k,:] = h @ W1lv_h + off_lv[k,:]
    w1lv_t = jnp.tile(w1_lv[:D, :], (1, K))                                   # (D, KC)
    off_lv = (code_mom @ w1_lv[D:, :] + b1_lv).reshape(1, KC).astype(jnp.float32)

    # mix head (padded to 128 lanes; pad bias -1e30 -> exp underflows to 0)
    bm1 = params["bm1"].astype(jnp.float32)
    wm2_p = jnp.pad(params["wm2"].astype(jnp.float32),
                    ((0, 0), (0, K_PAD - K))).astype(jnp.bfloat16)
    bm2_p = jnp.pad(params["bm2"].astype(jnp.float32), ((0, 0), (0, K_PAD - K)),
                    constant_values=-1e30)

    # One fused RHS for every matmul that contracts over D.
    w1mu_h_pad = jnp.pad(w1_mu[:D, :], ((0, 0), (0, C_PAD - C)))
    wcat = jnp.concatenate([params["wm1"].astype(jnp.float32),
                            w1mu_h_pad, w1lv_t], axis=1).astype(jnp.bfloat16)  # (D, 256+128+KC)

    # -------- row tiling (pad N; keep >=2 grid steps so v7x uses both TCs) --------
    N = B * T
    h_flat = h.reshape(N, D).astype(jnp.bfloat16)
    rt = max(8, (min(int(row_tile), 1024) // 8) * 8)
    if N >= 16:
        rt = min(rt, (((N + 1) // 2 + 7) // 8) * 8)
    else:
        rt = 8
    n_pad = ((N + rt - 1) // rt) * rt
    if n_pad != N:
        h_flat = jnp.pad(h_flat, ((0, n_pad - N), (0, 0)))
    grid = (n_pad // rt,)

    param_order = [wcat, bm1, wm2_p, bm2_p, off_lv, a_rhs, vo_flat, b2_flat, cc_tiled]
    in_specs = ([pl.BlockSpec((rt, D), lambda i: (i, 0))]
                + [pl.BlockSpec(p.shape, lambda i: (0, 0)) for p in param_order])
    out_specs = [pl.BlockSpec((rt, K_PAD), lambda i: (i, 0)),
                 pl.BlockSpec((rt, KC), lambda i: (i, 0)),
                 pl.BlockSpec((rt, KC), lambda i: (i, 0))]
    out_shape = (jax.ShapeDtypeStruct((n_pad, K_PAD), jnp.float32),
                 jax.ShapeDtypeStruct((n_pad, KC), jnp.bfloat16),
                 jax.ShapeDtypeStruct((n_pad, KC), jnp.bfloat16))

    kernel = functools.partial(_mixture_prior_kernel, mix_h=H_MIX, c=C, kc=KC,
                               ph_off=PH_OFF, lv_off=LV_OFF)

    mix_p, mu_p, lv_p = pl.pallas_call(
        kernel,
        out_shape=out_shape,
        grid=grid,
        in_specs=in_specs,
        out_specs=out_specs,
        compiler_params=pltpu.CompilerParams(dimension_semantics=("parallel",)),
    )(h_flat, *param_order)

    # TODO(synk): the [:N, :K] slice of the K_PAD=128 mix output costs an extra
    # HBM pass on padding; fuse it into the consumer (or keep the padded view)
    # when N is large and the kernel is memory-bound.
    mix = mix_p[:N, :K]
    mus = mu_p[:N].reshape(N, K, C)
    logvars = lv_p[:N].reshape(N, K, C)
    if is_3d:
        mix = mix.reshape(B, T, K)
        mus = mus.reshape(B, T, K, C)
        logvars = logvars.reshape(B, T, K, C)
    return mix, mus, logvars, code_mom


# ----------------------- deterministic parameter init -----------------------

def init_params(key, num_codes, code_dim, conf_dim, h_dim):
    ks = jax.random.split(key, 8)

    def linear(k, fan_in, fan_out):
        kw, kb = jax.random.split(k)
        lim = 1.0 / math.sqrt(fan_in)
        w = jax.random.uniform(kw, (fan_in, fan_out), jnp.float32, -lim, lim)
        b = jax.random.uniform(kb, (1, fan_out), jnp.float32, -lim, lim)
        return w, b

    # nn.Embedding default init: N(0, 1)
    code_embed = jax.random.normal(ks[0], (num_codes, code_dim), jnp.float32)
    # orthogonal init for the momentum buffer (orthonormal rows via QR)
    q, _ = jnp.linalg.qr(jax.random.normal(ks[1], (code_dim, num_codes), jnp.float32))
    code_emb_momentum = q.T.astype(jnp.float32)                          # (num_codes, code_dim)

    wm1, bm1 = linear(ks[2], h_dim, 256)
    wm2, bm2 = linear(ks[3], 256, num_codes)
    w1_mu, b1_mu = linear(ks[4], h_dim + code_dim, conf_dim)
    w2_mu, b2_mu = linear(ks[5], conf_dim, conf_dim)
    w1_lv, b1_lv = linear(ks[6], h_dim + code_dim, conf_dim)

    # PyTorch LayerNorm defaults are gamma=1 / beta=0; perturb slightly here so
    # the test actually exercises the affine path of the kernel.
    kg, kb = jax.random.split(ks[7])
    ln_gamma = 1.0 + 0.1 * jax.random.normal(kg, (1, conf_dim), jnp.float32)
    ln_beta = 0.1 * jax.random.normal(kb, (1, conf_dim), jnp.float32)

    return dict(code_embed=code_embed, code_emb_momentum=code_emb_momentum,
                wm1=wm1, bm1=bm1, wm2=wm2, bm2=bm2,
                w1_mu=w1_mu, b1_mu=b1_mu,
                ln_gamma=ln_gamma, ln_beta=ln_beta,
                w2_mu=w2_mu, b2_mu=b2_mu,
                w1_lv=w1_lv, b1_lv=b1_lv)


# --------------------------- pure-JAX f32 reference --------------------------

def reference_forward(params, h, momentum=0.9):
    is_3d = h.ndim == 3
    if not is_3d:
        h = h[:, None, :]
    B, T, D = h.shape
    code_mom = momentum * params["code_emb_momentum"] + (1.0 - momentum) * params["code_embed"]
    K, Cd = code_mom.shape

    z = h @ params["wm1"] + params["bm1"][0]
    z = z * jax.nn.sigmoid(z)
    logits = z @ params["wm2"] + params["bm2"][0]
    mix = jax.nn.softmax(logits, axis=-1)

    h_exp = jnp.broadcast_to(h[:, :, None, :], (B, T, K, D))
    codes = jnp.broadcast_to(code_mom[None, None], (B, T, K, Cd))
    comb = jnp.concatenate([h_exp, codes], axis=-1)

    x = comb @ params["w1_mu"] + params["b1_mu"][0]
    mean = x.mean(-1, keepdims=True)
    var = ((x - mean) ** 2).mean(-1, keepdims=True)
    xn = (x - mean) / jnp.sqrt(var + LN_EPS) * params["ln_gamma"][0] + params["ln_beta"][0]
    mu = jnp.clip(jnp.tanh(xn @ params["w2_mu"] + params["b2_mu"][0]), -3.0, 3.0)
    lv = jnp.clip(comb @ params["w1_lv"] + params["b1_lv"][0], LOG_MIN, LOG_MAX)

    if not is_3d:
        mix, mu, lv = mix[:, 0], mu[:, 0], lv[:, 0]
    return mix, mu, lv


if __name__ == "__main__":
    num_codes, code_dim, conf_dim, h_dim = 8, 16, 32, 32

    key = jax.random.PRNGKey(0)
    kp, kh1, kh2, kh3 = jax.random.split(key, 4)
    params = init_params(kp, num_codes, code_dim, conf_dim, h_dim)

    def run_and_check(h, row_tile=512):
        mix, mus, logvars, _ = mixture_confounder_prior_forward(params, h, row_tile=row_tile)
        jax.block_until_ready((mix, mus, logvars))
        rmix, rmu, rlv = reference_forward(params, h)
        # The whole forward follows the PyTorch bf16-autocast semantics of the
        # reference module (bf16 MXU operands, f32 accumulation, f32 softmax),
        # hence bf16-level tolerances against the f32 reference.
        np.testing.assert_allclose(np.asarray(mix), np.asarray(rmix), atol=2e-2, rtol=2e-2)
        np.testing.assert_allclose(np.asarray(mus.astype(jnp.float32)), np.asarray(rmu),
                                   atol=4e-2, rtol=4e-2)
        np.testing.assert_allclose(np.asarray(logvars.astype(jnp.float32)), np.asarray(rlv),
                                   atol=2e-2, rtol=2e-2)
        return mix, mus, logvars

    # 3-D input (B, T, D)
    B, T = 2, 8
    h3 = jax.random.normal(kh1, (B, T, h_dim), jnp.float32)
    mix, mus, logvars = run_and_check(h3)
    assert mix.shape == (B, T, num_codes) and mix.dtype == jnp.float32
    assert mus.shape == (B, T, num_codes, conf_dim) and mus.dtype == jnp.bfloat16
    assert logvars.shape == (B, T, num_codes, conf_dim) and logvars.dtype == jnp.bfloat16

    # 2-D input (B, D)
    h2 = jax.random.normal(kh2, (4, h_dim), jnp.float32)
    mix2, mus2, lv2 = run_and_check(h2)
    assert mix2.shape == (4, num_codes) and mus2.shape == (4, num_codes, conf_dim)

    # ragged N with multi-step grid (exercises the padding / remainder path)
    h_r = jax.random.normal(kh3, (2, 40, h_dim), jnp.float32)   # N=80 -> pad to 96, grid=(3,)
    run_and_check(h_r, row_tile=32)

    print("KERNEL_OK")
</pallas_src>

<mosaic_0001>
module attributes {stable_mosaic.version = 11 : i64} {
  func.func @_mixture_prior_kernel(%arg0: i32, %arg1: memref<8x32xbf16, #tpu.memory_space<vmem>>, %arg2: memref<32x640xbf16, #tpu.memory_space<vmem>>, %arg3: memref<1x256xf32, #tpu.memory_space<vmem>>, %arg4: memref<256x128xbf16, #tpu.memory_space<vmem>>, %arg5: memref<1x128xf32, #tpu.memory_space<vmem>>, %arg6: memref<1x256xf32, #tpu.memory_space<vmem>>, %arg7: memref<32x512xbf16, #tpu.memory_space<vmem>>, %arg8: memref<1x256xf32, #tpu.memory_space<vmem>>, %arg9: memref<1x256xf32, #tpu.memory_space<vmem>>, %arg10: memref<1x256xf32, #tpu.memory_space<vmem>>, %arg11: memref<8x128xf32, #tpu.memory_space<vmem>>, %arg12: memref<8x256xbf16, #tpu.memory_space<vmem>>, %arg13: memref<8x256xbf16, #tpu.memory_space<vmem>>) attributes {dimension_semantics = [#tpu.dimension_semantics<parallel>], iteration_bounds = array<i64: 2>, scalar_prefetch = 0 : i64, scratch_operands = 0 : i64, tpu.core_type = #tpu.core_type<tc>, window_params = [{transform_indices = @transform_0, window_bounds = array<i64: 8, 32>}, {pipeline_mode = #tpu.pipeline_mode<synchronous>, transform_indices = @transform_1, window_bounds = array<i64: 32, 640>}, {pipeline_mode = #tpu.pipeline_mode<synchronous>, transform_indices = @transform_2, window_bounds = array<i64: 1, 256>}, {pipeline_mode = #tpu.pipeline_mode<synchronous>, transform_indices = @transform_3, window_bounds = array<i64: 256, 128>}, {pipeline_mode = #tpu.pipeline_mode<synchronous>, transform_indices = @transform_4, window_bounds = array<i64: 1, 128>}, {pipeline_mode = #tpu.pipeline_mode<synchronous>, transform_indices = @transform_5, window_bounds = array<i64: 1, 256>}, {pipeline_mode = #tpu.pipeline_mode<synchronous>, transform_indices = @transform_6, window_bounds = array<i64: 32, 512>}, {pipeline_mode = #tpu.pipeline_mode<synchronous>, transform_indices = @transform_7, window_bounds = array<i64: 1, 256>}, {pipeline_mode = #tpu.pipeline_mode<synchronous>, transform_indices = @transform_8, window_bounds = array<i64: 1, 256>}, {pipeline_mode = #tpu.pipeline_mode<synchronous>, transform_indices = @transform_9, window_bounds = array<i64: 1, 256>}, {transform_indices = @transform_10, window_bounds = array<i64: 8, 128>}, {transform_indices = @transform_11, window_bounds = array<i64: 8, 256>}, {transform_indices = @transform_12, window_bounds = array<i64: 8, 256>}]} {
    %c0 = arith.constant 0 : index
    %c0_0 = arith.constant 0 : index
    %0 = vector.load %arg1[%c0, %c0_0] : memref<8x32xbf16, #tpu.memory_space<vmem>>, vector<8x32xbf16>
    %c0_1 = arith.constant 0 : index
    %c0_2 = arith.constant 0 : index
    %1 = vector.load %arg2[%c0_1, %c0_2] : memref<32x640xbf16, #tpu.memory_space<vmem>>, vector<32x640xbf16>
    %cst = arith.constant dense<0.000000e+00> : vector<8x640xf32>
    %2 = tpu.matmul %0, %1, %cst {dimension_numbers = #tpu.dot_dimension_numbers<[1], [0], [0], [1], [0, 0, 1, 1], [], []>} : vector<8x32xbf16>, vector<32x640xbf16>, vector<8x640xf32> -> vector<8x640xf32>
    %3 = vector.extract_strided_slice %2 {offsets = [0, 0], sizes = [8, 256], strides = [1, 1]} : vector<8x640xf32> to vector<8x256xf32>
    %c0_3 = arith.constant 0 : index
    %c0_4 = arith.constant 0 : index
    %4 = vector.load %arg3[%c0_3, %c0_4] : memref<1x256xf32, #tpu.memory_space<vmem>>, vector<1x256xf32>
    %5 = vector.broadcast %4 : vector<1x256xf32> to vector<8x256xf32>
    %6 = arith.addf %3, %5 : vector<8x256xf32>
    %7 = arith.negf %6 : vector<8x256xf32>
    %8 = math.exp %7 : vector<8x256xf32>
    %cst_5 = arith.constant 1.000000e+00 : f32
    %9 = vector.broadcast %cst_5 : f32 to vector<8x256xf32>
    %10 = arith.addf %9, %8 : vector<8x256xf32>
    %11 = arith.divf %9, %10 : vector<8x256xf32>
    %12 = arith.mulf %6, %11 : vector<8x256xf32>
    %13 = arith.truncf %12 : vector<8x256xf32> to vector<8x256xbf16>
    %c0_6 = arith.constant 0 : index
    %c0_7 = arith.constant 0 : index
    %14 = vector.load %arg4[%c0_6, %c0_7] : memref<256x128xbf16, #tpu.memory_space<vmem>>, vector<256x128xbf16>
    %cst_8 = arith.constant dense<0.000000e+00> : vector<8x128xf32>
    %15 = tpu.matmul %13, %14, %cst_8 {dimension_numbers = #tpu.dot_dimension_numbers<[1], [0], [0], [1], [0, 0, 1, 1], [], []>} : vector<8x256xbf16>, vector<256x128xbf16>, vector<8x128xf32> -> vector<8x128xf32>
    %c0_9 = arith.constant 0 : index
    %c0_10 = arith.constant 0 : index
    %16 = vector.load %arg5[%c0_9, %c0_10] : memref<1x128xf32, #tpu.memory_space<vmem>>, vector<1x128xf32>
    %17 = vector.broadcast %16 : vector<1x128xf32> to vector<8x128xf32>
    %18 = arith.addf %15, %17 : vector<8x128xf32>
    %cst_11 = arith.constant dense<0xFF800000> : vector<8xf32>
    %19 = vector.multi_reduction <maximumf>, %18, %cst_11 [1] : vector<8x128xf32> to vector<8xf32>
    %20 = vector.shape_cast %19 : vector<8xf32> to vector<8x1xf32>
    %21 = vector.broadcast %20 : vector<8x1xf32> to vector<8x128xf32>
    %22 = arith.subf %18, %21 : vector<8x128xf32>
    %23 = math.exp %22 : vector<8x128xf32>
    %cst_12 = arith.constant dense<0.000000e+00> : vector<8xf32>
    %24 = vector.multi_reduction <add>, %23, %cst_12 [1] : vector<8x128xf32> to vector<8xf32>
    %25 = vector.shape_cast %24 : vector<8xf32> to vector<8x1xf32>
    %26 = tpu.reciprocal %25 {approx = true} : vector<8x1xf32> -> vector<8x1xf32>
    %27 = vector.broadcast %26 : vector<8x1xf32> to vector<8x128xf32>
    %28 = arith.mulf %23, %27 : vector<8x128xf32>
    %c0_13 = arith.constant 0 : index
    %c0_14 = arith.constant 0 : index
    %29 = vector.load %arg11[%c0_13, %c0_14] : memref<8x128xf32, #tpu.memory_space<vmem>>, vector<8x128xf32>
    tpu.vector_store %arg11[%c0_13, %c0_14], %28 {strides = array<i32>} : memref<8x128xf32, #tpu.memory_space<vmem>>, vector<8x128xf32>,
    %30 = vector.extract_strided_slice %2 {offsets = [0, 384], sizes = [8, 256], strides = [1, 1]} : vector<8x640xf32> to vector<8x256xf32>
    %c0_15 = arith.constant 0 : index
    %c0_16 = arith.constant 0 : index
    %31 = vector.load %arg6[%c0_15, %c0_16] : memref<1x256xf32, #tpu.memory_space<vmem>>, vector<1x256xf32>
    %32 = vector.broadcast %31 : vector<1x256xf32> to vector<8x256xf32>
    %33 = arith.addf %30, %32 : vector<8x256xf32>
    %cst_17 = arith.constant -2.30258512 : f32
    %cst_18 = arith.constant 0.693147182 : f32
    %34 = vector.broadcast %cst_17 : f32 to vector<8x256xf32>
    %35 = arith.maximumf %34, %33 : vector<8x256xf32>
    %36 = vector.broadcast %cst_18 : f32 to vector<8x256xf32>
    %37 = arith.minimumf %36, %35 : vector<8x256xf32>
    %38 = arith.truncf %37 : vector<8x256xf32> to vector<8x256xbf16>
    %c0_19 = arith.constant 0 : index
    %c0_20 = arith.constant 0 : index
    %39 = vector.load %arg13[%c0_19, %c0_20] : memref<8x256xbf16, #tpu.memory_space<vmem>>, vector<8x256xbf16>
    tpu.vector_store %arg13[%c0_19, %c0_20], %38 {strides = array<i32>} : memref<8x256xbf16, #tpu.memory_space<vmem>>, vector<8x256xbf16>,
    %40 = vector.extract_strided_slice %2 {offsets = [0, 256], sizes = [8, 32], strides = [1, 1]} : vector<8x640xf32> to vector<8x32xf32>
    %cst_21 = arith.constant dense<0.000000e+00> : vector<8xf32>
    %41 = vector.multi_reduction <add>, %40, %cst_21 [1] : vector<8x32xf32> to vector<8xf32>
    %42 = vector.shape_cast %41 : vector<8xf32> to vector<8x1xf32>
    %cst_22 = arith.constant 3.200000e+01 : f32
    %43 = vector.broadcast %cst_22 : f32 to vector<8x1xf32>
    %44 = arith.divf %42, %43 : vector<8x1xf32>
    %45 = vector.broadcast %44 : vector<8x1xf32> to vector<8x32xf32>
    %46 = arith.subf %40, %45 : vector<8x32xf32>
    %47 = arith.mulf %46, %46 : vector<8x32xf32>
    %cst_23 = arith.constant dense<0.000000e+00> : vector<8xf32>
    %48 = vector.multi_reduction <add>, %47, %cst_23 [1] : vector<8x32xf32> to vector<8xf32>
    %49 = vector.shape_cast %48 : vector<8xf32> to vector<8x1xf32>
    %cst_24 = arith.constant 3.200000e+01 : f32
    %50 = vector.broadcast %cst_24 : f32 to vector<8x1xf32>
    %51 = arith.divf %49, %50 : vector<8x1xf32>
    %52 = arith.truncf %46 : vector<8x32xf32> to vector<8x32xbf16>
    %c0_25 = arith.constant 0 : index
    %c0_26 = arith.constant 0 : index
    %53 = vector.load %arg7[%c0_25, %c0_26] : memref<32x512xbf16, #tpu.memory_space<vmem>>, vector<32x512xbf16>
    %cst_27 = arith.constant dense<0.000000e+00> : vector<8x512xf32>
    %54 = tpu.matmul %52, %53, %cst_27 {dimension_numbers = #tpu.dot_dimension_numbers<[1], [0], [0], [1], [0, 0, 1, 1], [], []>} : vector<8x32xbf16>, vector<32x512xbf16>, vector<8x512xf32> -> vector<8x512xf32>
    %55 = vector.extract_strided_slice %54 {offsets = [0, 0], sizes = [8, 256], strides = [1, 1]} : vector<8x512xf32> to vector<8x256xf32>
    %56 = vector.extract_strided_slice %54 {offsets = [0, 256], sizes = [8, 256], strides = [1, 1]} : vector<8x512xf32> to vector<8x256xf32>
    %c0_28 = arith.constant 0 : index
    %c0_29 = arith.constant 0 : index
    %57 = vector.load %arg8[%c0_28, %c0_29] : memref<1x256xf32, #tpu.memory_space<vmem>>, vector<1x256xf32>
    %58 = vector.broadcast %51 : vector<8x1xf32> to vector<8x256xf32>
    %59 = vector.broadcast %57 : vector<1x256xf32> to vector<8x256xf32>
    %60 = arith.addf %58, %59 : vector<8x256xf32>
    %61 = arith.addf %60, %55 : vector<8x256xf32>
    %cst_30 = arith.constant 0.000000e+00 : f32
    %62 = vector.broadcast %cst_30 : f32 to vector<8x256xf32>
    %63 = arith.maximumf %61, %62 : vector<8x256xf32>
    %cst_31 = arith.constant 9.99999974E-6 : f32
    %64 = vector.broadcast %cst_31 : f32 to vector<8x256xf32>
    %65 = arith.addf %63, %64 : vector<8x256xf32>
    %66 = math.rsqrt %65 : vector<8x256xf32>
    %c0_32 = arith.constant 0 : index
    %c0_33 = arith.constant 0 : index
    %67 = vector.load %arg9[%c0_32, %c0_33] : memref<1x256xf32, #tpu.memory_space<vmem>>, vector<1x256xf32>
    %68 = vector.broadcast %67 : vector<1x256xf32> to vector<8x256xf32>
    %69 = arith.addf %56, %68 : vector<8x256xf32>
    %70 = arith.mulf %66, %69 : vector<8x256xf32>
    %c0_34 = arith.constant 0 : index
    %c0_35 = arith.constant 0 : index
    %71 = vector.load %arg10[%c0_34, %c0_35] : memref<1x256xf32, #tpu.memory_space<vmem>>, vector<1x256xf32>
    %72 = vector.broadcast %71 : vector<1x256xf32> to vector<8x256xf32>
    %73 = arith.addf %70, %72 : vector<8x256xf32>
    %74 = math.tanh %73 : vector<8x256xf32>
    %75 = arith.truncf %74 : vector<8x256xf32> to vector<8x256xbf16>
    %c0_36 = arith.constant 0 : index
    %c0_37 = arith.constant 0 : index
    %76 = vector.load %arg12[%c0_36, %c0_37] : memref<8x256xbf16, #tpu.memory_space<vmem>>, vector<8x256xbf16>
    tpu.vector_store %arg12[%c0_36, %c0_37], %75 {strides = array<i32>} : memref<8x256xbf16, #tpu.memory_space<vmem>>, vector<8x256xbf16>,
    return
  }
  func.func @transform_0(%arg0: i32) -> (i32, i32) {
    %c0_i32 = arith.constant 0 : i32
    %c0_i32_0 = arith.constant 0 : i32
    return %arg0, %c0_i32 : i32, i32
  }
  func.func @transform_1(%arg0: i32) -> (i32, i32) {
    %c0_i32 = arith.constant 0 : i32
    %c0_i32_0 = arith.constant 0 : i32
    %c0_i32_1 = arith.constant 0 : i32
    return %c0_i32, %c0_i32_0 : i32, i32
  }
  func.func @transform_2(%arg0: i32) -> (i32, i32) {
    %c0_i32 = arith.constant 0 : i32
    %c0_i32_0 = arith.constant 0 : i32
    %c0_i32_1 = arith.constant 0 : i32
    return %c0_i32, %c0_i32_0 : i32, i32
  }
  func.func @transform_3(%arg0: i32) -> (i32, i32) {
    %c0_i32 = arith.constant 0 : i32
    %c0_i32_0 = arith.constant 0 : i32
    %c0_i32_1 = arith.constant 0 : i32
    return %c0_i32, %c0_i32_0 : i32, i32
  }
  func.func @transform_4(%arg0: i32) -> (i32, i32) {
    %c0_i32 = arith.constant 0 : i32
    %c0_i32_0 = arith.constant 0 : i32
    %c0_i32_1 = arith.constant 0 : i32
    return %c0_i32, %c0_i32_0 : i32, i32
  }
  func.func @transform_5(%arg0: i32) -> (i32, i32) {
    %c0_i32 = arith.constant 0 : i32
    %c0_i32_0 = arith.constant 0 : i32
    %c0_i32_1 = arith.constant 0 : i32
    return %c0_i32, %c0_i32_0 : i32, i32
  }
  func.func @transform_6(%arg0: i32) -> (i32, i32) {
    %c0_i32 = arith.constant 0 : i32
    %c0_i32_0 = arith.constant 0 : i32
    %c0_i32_1 = arith.constant 0 : i32
    return %c0_i32, %c0_i32_0 : i32, i32
  }
  func.func @transform_7(%arg0: i32) -> (i32, i32) {
    %c0_i32 = arith.constant 0 : i32
    %c0_i32_0 = arith.constant 0 : i32
    %c0_i32_1 = arith.constant 0 : i32
    return %c0_i32, %c0_i32_0 : i32, i32
  }
  func.func @transform_8(%arg0: i32) -> (i32, i32) {
    %c0_i32 = arith.constant 0 : i32
    %c0_i32_0 = arith.constant 0 : i32
    %c0_i32_1 = arith.constant 0 : i32
    return %c0_i32, %c0_i32_0 : i32, i32
  }
  func.func @transform_9(%arg0: i32) -> (i32, i32) {
    %c0_i32 = arith.constant 0 : i32
    %c0_i32_0 = arith.constant 0 : i32
    %c0_i32_1 = arith.constant 0 : i32
    return %c0_i32, %c0_i32_0 : i32, i32
  }
  func.func @transform_10(%arg0: i32) -> (i32, i32) {
    %c0_i32 = arith.constant 0 : i32
    %c0_i32_0 = arith.constant 0 : i32
    return %arg0, %c0_i32 : i32, i32
  }
  func.func @transform_11(%arg0: i32) -> (i32, i32) {
    %c0_i32 = arith.constant 0 : i32
    %c0_i32_0 = arith.constant 0 : i32
    return %arg0, %c0_i32 : i32, i32
  }
  func.func @transform_12(%arg0: i32) -> (i32, i32) {
    %c0_i32 = arith.constant 0 : i32
    %c0_i32_0 = arith.constant 0 : i32
    return %arg0, %c0_i32 : i32, i32
  }
}

</mosaic_0001>

<bundles_post_ra>
// kernel: tpu_custom_call.1
= control target key start
LH: loop header
LB: loop body
LE: loop exit
PB: predicated region body
PF: predicated region fallthrough
CT: control target
= control target key end

     0   :  { %s2300_s0 = inlined_call_operand.hbm [shape: bf16[16,32], index: 0, kind: input, shape index: {}]   ;;  %s2301_s1 = inlined_call_operand.hbm [shape: bf16[32,640], index: 1, kind: input, shape index: {}]   ;;  %s2302_s2 = inlined_call_operand.vmem [shape: f32[1,256], index: 2, kind: input, shape index: {}]   ;;  %s2303_s3 = inlined_call_operand.hbm [shape: bf16[256,128], index: 3, kind: input, shape index: {}]   ;;  %s2304_s4 = inlined_call_operand.vmem [shape: f32[1,128], index: 4, kind: input, shape index: {}]   ;;  %s2305_s5 = inlined_call_operand.vmem [shape: f32[1,256], index: 5, kind: input, shape index: {}]   ;;  %s2306_s6 = inlined_call_operand.hbm [shape: bf16[32,512], index: 6, kind: input, shape index: {}]   ;;  %s2307_s7 = inlined_call_operand.vmem [shape: f32[1,256], index: 7, kind: input, shape index: {}]   ;;  %s2308_s8 = inlined_call_operand.vmem [shape: f32[1,256], index: 8, kind: input, shape index: {}]   ;;  %s2309_s9 = inlined_call_operand.vmem [shape: f32[1,256], index: 9, kind: input, shape index: {}]   ;;  %s2310_s10 = inlined_call_operand.hbm [shape: f32[16,128], index: 10, kind: output, shape index: {0}]   ;;  %s2311_s11 = inlined_call_operand.hbm [shape: bf16[16,256], index: 11, kind: output, shape index: {1}]   ;;  %s2312_s12 = inlined_call_operand.hbm [shape: bf16[16,256], index: 12, kind: output, shape index: {2}]  }
   0x1   :  { %2322 = sst [smem:[#allocation21_spill]] %s2300_s0 }
   0x2   :  { %2323 = sst [smem:[#allocation22_spill]] %s2301_s1 }
   0x3   :  { %2324 = sst [smem:[#allocation23_spill]] %s2302_s2 }
   0x4   :  { %2325 = sst [smem:[#allocation24_spill]] %s2310_s10 }
   0x5   :  { %2326 = sst [smem:[#allocation25_spill]] %s2311_s11 }
   0x6   :  { %2327 = sst [smem:[#allocation26_spill]] %s2312_s12 }
   0x7   :  { %18 = vsyncpa [#allocation3], 0 }
   0x8   :  { %20 = vsyncpa [#allocation3 + $0x1], 0 }
   0x9   :  { %21 = vsyncpa [#allocation6], 0 }
   0xa   :  { %22 = vsyncpa [#allocation9], 0 }
   0xb   :  { %23 = vsyncpa [#allocation4], 0 }
   0xc   :  { %25 = vsyncpa [#allocation4 + $0x1], 0 }
   0xd   :  { %26 = vsyncpa [#allocation12], 0 }
   0xe   :  { %28 = vsyncpa [#allocation12 + $0x1], 0  ;;  %s1941_s21 = smov 0   ;;  %s1943_s22 = smov 0  }
   0xf   :  { %s1945_s23 = smov 0   ;;  %s1947_s24 = smov 0  }
  0x10 LB: > { %2328 = sst [smem:[#allocation19_spill]] %s1846_s21  ;;  %s1962_s25 = sadd.s32 4294967295, %s1858_s24   ;;  %s1858_s24 = sphi %s1947_s24, %s2358_s24   ;;  %s1854_s23 = sphi %s1945_s23, %s2357_s23   ;;  %s1850_s22 = sphi %s1943_s22, %s2356_s22   ;;  %s1846_s21 = sphi %s1941_s21, %s2355_s21  }
  0x11   : > { %s2313_s26 = sadd.s32 4294967294, %s1858_s24   ;;  %p54_p0 = scmp.ne.s32.totalorder %s1850_s22, %s1846_s21 }
  0x12   : > { %p2315_p1 = scmp.eq.s32.totalorder %s1962_s25, 0  ;;  %p273_p3 = scmp.eq.s32.totalorder %s2313_s26, 1 }
  0x13   : > { %p1346_p5 = scmp.ge.s32.totalorder %s1858_s24, 1  ;;  %p332_p7 = scmp.lt.s32.totalorder %s1858_s24, 3 }
  0x14   : > { %p1973_p4 = por %p2315_p1, %p54_p0  ;;  %p1978_p6 = por %p273_p3, %p54_p0 }
  0x15   : > { %p1983_p8 = pnand %p1346_p5, %p332_p7  ;;  %s1860_s30 = smov [#allocation5]  }
  0x16   : > { %s2329_s27 = scalar_select %p1973_p4, 1, 0 }
  0x17   : > { %s2330_s28 = scalar_select %p1978_p6, 1, 0 }
  0x18   : > { %s2332_s29 = scalar_select %p1983_p8, 1, 0 }
  0x19   : > { %2331 = sst [smem:[#allocation20_spill]] %s2330_s28  ;;  %s344_s13 = sshll.u32 %s1860_s30, 4  ;;  %s1987_s13 = int_to_ptr.vmem [resolvable:$true] %s344_s13 }
  0x1a   : > { %p1472_p9 = pneg %p1983_p8  ;;  %s1861_s15 = smov [#allocation7]  }
  0x1b   : > { %s360_s16 = sshll.u32 %s1861_s15, 4  ;;  %s2334_s1 = sld [smem:[#allocation22_spill]]  ;;  %s1998_s16 = int_to_ptr.vmem [resolvable:$true] %s360_s16 }
  0x1c   : > { %p1994_p11 = pnand %p1472_p9, %p2315_p1 }
  0x1e   : > { %p2008_p13 = pneg %p1994_p11 }
  0x21   : > { %s1610_s19 = scalar_lea.hbm %s2334_s1, 1280 }
  0x22   : > { %p1611_p12 = scmp.ne.s32.totalorder %s2334_s1, %s1610_s19  ;;  %p1617_p5 = scmp.lt.u32.totalorder %s1610_s19, %s2334_s1 }
  0x24   : > { %p1613_p0 = pnand %p2008_p13, %p1611_p12 }
  0x26   : > { %p1614_p3 = pneg %p1613_p0 }
  0x28   : > { %p1619_p7 = pnand %p1617_p5, %p1614_p3 }
  0x2a   : > { %1622 = shalt.err (!%p1619_p7)
}
  0x2b   : > { %s1623_s17 = scalar_lea.vmem %s1987_s13, 1280  ;;  %p1631_p2 = scmp.lt.s32.totalorder %s1987_s13, %s1987_s13 }
  0x2c   : > { %p1624_p9 = scmp.ne.s32.totalorder %s1987_s13, %s1623_s17  ;;  %p1632_p6 = scmp.lt.s32.totalorder %s1623_s17, %s1623_s17 }
  0x2e   : > { %p1626_p10 = pnand %p1624_p9, %p2008_p13  ;;  %p1633_p12 = por %p1632_p6, %p1631_p2 }
  0x30   : > { %p1627_p1 = pneg %p1626_p10 }
  0x32   : > { %p1634_p0 = pnand %p1633_p12, %p1627_p1 }
  0x34   : > { %1637 = shalt.err (!%p1634_p0)
}
  0x35   : > { %s1862_s18 = smov 320   ;;  %s1863_s28 = smov 20  }
  0x36   : > { %1475 = dma.hbm_to_vmem [thread:$0]  (!%p1994_p11), %s2334_s1, 1280, %s1987_s13, [#allocation6], %s1862_s18, %s1862_s18, %s1863_s28  }
  0x37   : > { %s1638_s21 = scalar_lea.hbm %s2303_s3, 2048 }
  0x38   : > { %p1639_p2 = scmp.ne.s32.totalorder %s2303_s3, %s1638_s21  ;;  %p1645_p10 = scmp.lt.u32.totalorder %s1638_s21, %s2303_s3 }
  0x3a   : > { %p1641_p1 = pnand %p1639_p2, %p2008_p13 }
  0x3c   : > { %p1642_p6 = pneg %p1641_p1 }
  0x3e   : > { %p1647_p3 = pnand %p1645_p10, %p1642_p6 }
  0x40   : > { %1650 = shalt.err (!%p1647_p3)
}
  0x41   : > { %s1651_s13 = scalar_lea.vmem %s1998_s16, 2048  ;;  %p1659_p12 = scmp.lt.s32.totalorder %s1998_s16, %s1998_s16 }
  0x42   : > { %p1652_p5 = scmp.ne.s32.totalorder %s1998_s16, %s1651_s13  ;;  %p1660_p0 = scmp.lt.s32.totalorder %s1651_s13, %s1651_s13 }
  0x44   : > { %p1654_p7 = pnand %p1652_p5, %p2008_p13  ;;  %p1661_p2 = por %p1660_p0, %p1659_p12 }
  0x46   : > { %p1655_p9 = pneg %p1654_p7 }
  0x48   : > { %p1662_p1 = pnand %p1661_p2, %p1655_p9 }
  0x4a   : > { %1665 = shalt.err (!%p1662_p1)
}
  0x4b   : > { %s1864_s10 = smov 64   ;;  %s1865_s11 = smov 4  }
  0x4c   : > { %1478 = dma.hbm_to_vmem [thread:$0]  (!%p1994_p11), %s2303_s3, 2048, %s1998_s16, [#allocation6], %s1864_s10, %s1864_s10, %s1865_s11  }
  0x4d   : > { %s1866_s18 = smov [#allocation8]   ;;  %s1666_s30 = scalar_lea.hbm %s2306_s6, 1024 }
  0x4e   : > { %s379_s28 = sshll.u32 %s1866_s18, 4  ;;  %p1667_p6 = scmp.ne.s32.totalorder %s2306_s6, %s1666_s30  ;;  %s380_s28 = int_to_ptr.vmem [resolvable:$true] %s379_s28 }
  0x4f   : > { %p1673_p5 = scmp.lt.u32.totalorder %s1666_s30, %s2306_s6 }
  0x50   : > { %p1669_p10 = pnand %p1667_p6, %p2008_p13 }
  0x52   : > { %p1670_p3 = pneg %p1669_p10 }
  0x54   : > { %p1675_p7 = pnand %p1673_p5, %p1670_p3 }
  0x56   : > { %1678 = shalt.err (!%p1675_p7)
}
  0x57   : > { %s1679_s16 = scalar_lea.vmem %s380_s28, 1024  ;;  %p1687_p2 = scmp.lt.s32.totalorder %s380_s28, %s380_s28 }
  0x58   : > { %p1680_p9 = scmp.ne.s32.totalorder %s380_s28, %s1679_s16  ;;  %p1688_p1 = scmp.lt.s32.totalorder %s1679_s16, %s1679_s16 }
  0x5a   : > { %p1682_p12 = pnand %p1680_p9, %p2008_p13  ;;  %p1689_p4 = por %p1688_p1, %p1687_p2 }
  0x5c   : > { %p1683_p0 = pneg %p1682_p12 }
  0x5e   : > { %p1690_p8 = pnand %p1689_p4, %p1683_p0 }
  0x60   : > { %1693 = shalt.err (!%p1690_p8)
}
  0x61   : > { %s1867_s10 = smov 256   ;;  %s1868_s1 = smov 16  }
  0x62   : > { %1481 = dma.hbm_to_vmem [thread:$0]  (!%p1994_p11), %s2306_s6, 1024, %s380_s28, [#allocation9], %s1867_s10, %s1867_s10, %s1868_s1  }
  0x63   : > { %s2071_s12 = sadd.s32 1, %s1858_s24   ;;  %s41_s18 = sadd.s32 1, %s1854_s23 }
  0x64   : > { %s38_s21 = ssub.s32 %s1858_s24, %s2071_s12  ;;  %p48_p8 = scmp.ne.s32.totalorder %s1854_s23, %s1850_s22 }
  0x65   : > { %p39_p4 = scmp.eq.s32.totalorder %s38_s21, 0  ;;  %p49_p13 = scmp.eq.s32.totalorder %s1858_s24, 0 }
  0x66   : > { %p1499_p6 = scmp.lt.s32.totalorder %s1858_s24, 2  ;;  %p2336_p3 = scmp.eq.s32.totalorder %s1962_s25, 1 }
  0x67   : > { %s2081_s19 = scalar_select %p39_p4, %s1854_s23, %s41_s18  }
  0x68   : > { %p50_p10 = por %p49_p13, %p48_p8  ;;  %p2085_p5 = por %p2336_p3, %p48_p8 }
  0x69   : > { %s402_s14 = sand.u32 1, %s1854_s23   ;;  %s1352_s30 = sshll.u32 %s1858_s24, 6 }
  0x6a   : > { %s1351_s28 = sshll.u32 %s402_s14, 2  ;;  %s2338_s0 = sld [smem:[#allocation21_spill]] }
  0x6b   : > { %s406_s16 = scalar_lea.vmem [#allocation2], %s1351_s28  ;;  %p2096_p11 = pnand %p1499_p6, %p50_p10 }
  0x6c   : > { %s413_s10 = sshll.u32 %s406_s16, 4  ;;  %s403_s26 = scalar_lea.sflag [#allocation3], %s402_s14  ;;  %s2100_s10 = int_to_ptr.vmem [resolvable:$true] %s413_s10 }
  0x6d   : > { %p1696_p9 = pneg %p2096_p11 }
  0x70   : > { %s2094_s13 = scalar_lea.hbm %s2338_s0, %s1352_s30  ;;  %s1699_s30 = scalar_lea.hbm %s2338_s0, 128 }
  0x71   : > { %s1694_s11 = scalar_lea.hbm %s2094_s13, 64  ;;  %p1700_p2 = scmp.lt.u32.totalorder %s2094_s13, %s2338_s0 }
  0x72   : > { %p1695_p7 = scmp.ne.s32.totalorder %s2094_s13, %s1694_s11  ;;  %p1701_p1 = scmp.lt.u32.totalorder %s1699_s30, %s1694_s11 }
  0x73   : > { %p1703_p8 = scmp.lt.u32.totalorder %s1694_s11, %s2094_s13 }
  0x74   : > { %p1697_p12 = pnand %p1696_p9, %p1695_p7  ;;  %p1702_p4 = por %p1701_p1, %p1700_p2 }
  0x76   : > { %p1698_p0 = pneg %p1697_p12  ;;  %p1704_p13 = por %p1703_p8, %p1702_p4 }
  0x78   : > { %p1705_p6 = pnand %p1704_p13, %p1698_p0 }
  0x7a   : > { %1708 = shalt.err (!%p1705_p6)
}
  0x7b   : > { %s1709_s14 = scalar_lea.vmem %s2100_s10, 64  ;;  %s1869_s17 = smov [#allocation2]  }
  0x7c   : > { %p1710_p10 = scmp.ne.s32.totalorder %s2100_s10, %s1709_s14  ;;  %s1714_s16 = sshll.u32 %s1869_s17, 4  ;;  %s1715_s16 = int_to_ptr.vmem [resolvable:$false] %s1714_s16 }
  0x7d   : > { %s1716_s21 = scalar_lea.vmem %s1715_s16, 128  ;;  %p1717_p12 = scmp.lt.s32.totalorder %s2100_s10, %s1715_s16 }
  0x7e   : > { %p1712_p3 = pnand %p1710_p10, %p1696_p9  ;;  %p1718_p2 = scmp.lt.s32.totalorder %s1716_s21, %s1709_s14 }
  0x80   : > { %p1713_p7 = pneg %p1712_p3  ;;  %p1719_p1 = por %p1718_p2, %p1717_p12 }
  0x82   : > { %p1720_p4 = pnand %p1719_p1, %p1713_p7 }
  0x84   : > { %1723 = shalt.err (!%p1720_p4)
}
  0x85   : > { %1485 = dma.hbm_to_vmem [thread:$0]  (!%p2096_p11), %s2094_s13, 64, %s2100_s10, %s403_s26  }
  0x86   : > { %p2340_p0 = scmp.ne.s32.totalorder %s2332_s29, 0 }
  0x87   : > { %s2130_s11 = sand.u32 (!%p2340_p0), 1, %s1850_s22   ;;  %p2341_p9 = scmp.ne.s32.totalorder (!%p2340_p0), %s2329_s27, 0 }
  0x88   : > { %422 = sbr.rel (%p2340_p0) target bundleno = 949 (0x3b5), region = 60  ;;  %s1354_s18 = sshll.u32 (!%p2340_p0), %s2130_s11, 2 }
  0x89   : > { %s425_s30 = scalar_lea.sflag (!%p2340_p0), [#allocation3], %s2130_s11  ;;  %s428_s28 = scalar_lea.vmem (!%p2340_p0), [#allocation2], %s1354_s18 }
  0x8f   : > { %1825 = dma.done.wait (%p2341_p9), %s425_s30, 64  }
  0x90   : > { %1827 = vsyncadd (%p2341_p9), %s425_s30, 4294967232  ;;  %p2342_p8 = scmp.eq.s32.totalorder %s1962_s25, 0 }
  0x92   : > { %1829 = dma.done.wait (%p2342_p8), [#allocation6], 3328   ;;  %p2343_p11 = pmov %p2342_p8 }
  0x93   : > { %p2344_p13 = pmov %p2342_p8 }
  0x94   : > { %1831 = vsyncadd (%p2343_p11), [#allocation6], 4294963968 }
  0x95   : > { %1833 = dma.done.wait (%p2344_p13), [#allocation9], 1024   ;;  %p2345_p6 = pmov %p2342_p8 }
  0x96   : > { %v1870_v0 = vmov 0   ;;  %v1548_v1 = vld [vmem:[#allocation5 + $0x4] ss:$20 sps:$4 sm:$0xff]   ;;  %v1550_v2 = vld [vmem:[#allocation5 + $0xc] ss:$20 sps:$4 sm:$0xff]   ;;  %vm557_vm0 = vcmask 261120   ;;  %v685_v31 = vlaneseq }
  0x97   : > { %1835 = vsyncadd (%p2345_p6), [#allocation9], 4294966272  ;;  %593 = vmatprep.mubr.bf16.mxu0 %v1870_v0  ;;  %634 = vmatprep.mubr.bf16.mxu1 %v1870_v0  ;;  %v1552_v3 = vld [vmem:[#allocation5] ss:$20 sps:$4 sm:$0xff]   ;;  %v1553_v4 = vld [vmem:[#allocation5 + $0x8] ss:$20 sps:$4 sm:$0xff]  }
  0x98   : > { %561 = vmatprep.subr.bf16.mxu0 %v1548_v1  ;;  %602 = vmatprep.subr.bf16.mxu1 %v1550_v2  ;;  %v1554_v5 = vld [vmem:[#allocation5 + $0x2c] ss:$20 sps:$4 sm:$0xff]   ;;  %v1556_v6 = vld [vmem:[#allocation5 + $0x34] ss:$20 sps:$4 sm:$0xff]   ;;  %v1559_v8 = vld [vmem:[#allocation5 + $0x30] ss:$20 sps:$4 sm:$0xff]  }
  0x99   : > { %562 = vmatpush1.bf16.msra.mxu0 %v1552_v3  ;;  %603 = vmatpush1.bf16.msra.mxu1 %v1553_v4  ;;  %v1558_v7 = vld [vmem:[#allocation5 + $0x28] ss:$20 sps:$4 sm:$0xff]   ;;  %v1560_v10 = vld [vmem:[#allocation5 + $0x10] ss:$20 sps:$4 sm:$0xff]   ;;  %v1871_v11 = vmov 0.0   ;;  %vm1872_vm1 = vmmov 0  }
  0x9a   : > { %563 = vmatprep.subr.bf16.mxu0 %v1554_v5  ;;  %604 = vmatprep.subr.bf16.mxu1 %v1556_v6  ;;  %v492_v9 = vld [vmem:[%s428_s28] sm:$0xf]  ;;  %v1562_v13 = vld [vmem:[#allocation7 + $0x40] sm:$0xff]   ;;  %v1566_v17 = vld [vmem:[#allocation7 + $0x50] sm:$0xff]   ;;  %v686_v32 = vshrl.u32 %v685_v31, 7  ;;  %s2346_s2 = sld [smem:[#allocation23_spill]] }
  0x9b   : > { %v1561_v12 = vld [vmem:[#allocation5 + $0x38] ss:$20 sps:$4 sm:$0xff]   ;;  %v1563_v14 = vld [vmem:[#allocation7] sm:$0xff]   ;;  %v1567_v18 = vld [vmem:[#allocation7 + $0x10] sm:$0xff]   ;;  %s2168_s1 = sshll.u32 %s2130_s11, 3  ;;  %s1138_s29 = sand.u32 1, %s1962_s25  }
  0x9c   : > { %v1564_v15 = vld [vmem:[#allocation7 + $0x48] sm:$0xff]   ;;  %v1568_v19 = vld [vmem:[#allocation7 + $0x58] sm:$0xff]   ;;  %v1570_v21 = vld [vmem:[#allocation7 + $0x60] sm:$0xff]   ;;  %v2152_v33 = vsub.s32 0, %v686_v32  ;;  %v2157_v35 = vsub.s32 1, %v686_v32  ;;  %s490_s26 = scalar_lea.vmem [#allocation13], %s2168_s1 }
  0x9d   : > { %564 = vmatpush1.bf16.msra.mxu0 %v1558_v7  ;;  %605 = vmatpush1.bf16.msra.mxu1 %v1559_v8  ;;  %v1565_v16 = vld [vmem:[#allocation7 + $0x8] sm:$0xff]   ;;  %v1569_v20 = vld [vmem:[#allocation7 + $0x18] sm:$0xff]   ;;  %v1571_v22 = vld [vmem:[#allocation7 + $0x20] sm:$0xff]   ;;  %s483_s27 = scalar_lea.vmem [#allocation11], %s2168_s1  ;;  %s2201_s13 = sshll.u32 %s1962_s25, 7 }
  0x9e   : > { %1444 = vmatprep.subr.bf16.mxu0 %v1871_v11  ;;  %1422 = vmatprep.subr.bf16.mxu1 %v1562_v13  ;;  %v1572_v23 = vld [vmem:[#allocation7 + $0x68] sm:$0xff]   ;;  %v1574_v25 = vld [vmem:[#allocation7 + $0x70] sm:$0xff]   ;;  %v1576_v27 = vld [vmem:[#allocation7 + $0x78] sm:$0xff]   ;;  %s2347_s14 = sld [smem:[#allocation25_spill]]  ;;  %s1171_s16 = sshll.u32 %s483_s27, 4  ;;  %s1172_s16 = int_to_ptr.vmem [resolvable:$true] %s1171_s16 }
  0x9f   : > { %v1573_v24 = vld [vmem:[#allocation7 + $0x28] sm:$0xff]   ;;  %v1575_v26 = vld [vmem:[#allocation7 + $0x30] sm:$0xff]   ;;  %v1577_v28 = vld [vmem:[#allocation7 + $0x38] sm:$0xff]   ;;  %s2209_s21 = scalar_lea.sflag [#allocation12], %s1138_s29  ;;  %s1724_s18 = scalar_lea.vmem %s1172_s16, 128 }
  0xa0   : > { %1371 = vmatmul.mubr.msk.bf16.vlgmr.msra.gmra.mrb[0].mxu0 %vm557_vm0, %v492_v9  ;;  %1372 = vmatmul.mubr.msk.bf16.vlgmr.msra.gmra.mrb[0].mxu1 %vm557_vm0, %v492_v9  ;;  %v1578_v29 = vld [vmem:[#allocation8] ss:$16 sps:$4 sm:$0xff]   ;;  %v1580_v30 = vld [vmem:[#allocation8 + $0x4] ss:$16 sps:$4 sm:$0xff]   ;;  %v683_v34 = vld [vmem:[%s2346_s2] sm:$0x3]  ;;  %p1725_p10 = scmp.ne.s32.totalorder %s1172_s16, %s1724_s18 }
  0xa1   : > { %1445 = vmatpush3.bf16.msra.mxu0 %v1560_v10  ;;  %1448 = vmatprep.mubr.msk.bf16.mxu0 %vm1872_vm1, %v1871_v11  ;;  %v688_v36 = vrot.slane %v683_v34, %v2152_v33  ;;  %v692_v37 = vrot.slane %v683_v34, %v2157_v35  ;;  %v1583_v51 = vld [vmem:[#allocation8 + $0x24] ss:$16 sps:$4 sm:$0xff]   ;;  %v1581_v53 = vld [vmem:[#allocation8 + $0x20] ss:$16 sps:$4 sm:$0xff]   ;;  %v1586_v54 = vld [vmem:[#allocation8 + $0xc] ss:$16 sps:$4 sm:$0xff]  }
  0xa2   : > { %1446 = vmatprep.subr.bf16.mxu0 %v1871_v11  ;;  %1423 = vmatpush3.bf16.msra.mxu1 %v1563_v14  ;;  %v898_v56 = vld [vmem:[%s2305_s5] sm:$0x3]  ;;  %p1726_p3 = pnand %p1725_p10, %p2085_p5  ;;  %s1873_s30 = smov [#allocation11]  }
  0xa3   : > { %1424 = vmatprep.subr.bf16.mxu1 %v1564_v15  ;;  %v903_v58 = vrot.slane %v898_v56, %v2152_v33  ;;  %v907_v3 = vrot.slane %v898_v56, %v2157_v35  ;;  %v1108_v56 = vld [vmem:[%s2309_s9] sm:$0x3]  ;;  %s1728_s28 = sshll.u32 %s1873_s30, 4  ;;  %s1729_s28 = int_to_ptr.vmem [resolvable:$false] %s1728_s28 }
  0xa4   : > { %s2207_s17 = scalar_lea.hbm %s2347_s14, %s2201_s13  ;;  %p1727_p7 = pneg %p1726_p3 }
  0xa5   : > { %1447 = vmatpush3.bf16.msra.mxu0 %v1561_v12  ;;  %s1730_s25 = scalar_lea.vmem %s1729_s28, 256  ;;  %p1731_p12 = scmp.lt.s32.totalorder %s1172_s16, %s1729_s28 }
  0xa6   : > { %1425 = vmatpush3.bf16.msra.mxu1 %v1565_v16  ;;  %988 = vmatprep.subr.bf16.mxu0 %v1580_v30  ;;  %p1732_p2 = scmp.lt.s32.totalorder %s1730_s25, %s1724_s18 }
  0xa7   : > { %1426 = vmatprep.subr.bf16.mxu1 %v1566_v17 }
  0xa8   : > { %1449 = vmatmul.mubr.msk.bf16.vlgmr.msra.gmra.mrb[4].mxu0 %vm557_vm0, %v492_v9  ;;  %p1733_p1 = por %p1732_p2, %p1731_p12 }
  0xa9   : > { %1020 = vmatprep.mubr.bf16.mxu0 %v1870_v0  ;;  %989 = vmatpush1.bf16.msra.mxu0 %v1578_v29 }
  0xaa   : > { %1427 = vmatpush3.bf16.msra.mxu1 %v1567_v18  ;;  %990 = vmatprep.subr.bf16.mxu0 %v1583_v51  ;;  %v1584_v18 = vld [vmem:[#allocation8 + $0x8] ss:$16 sps:$4 sm:$0xff]   ;;  %p1734_p4 = pnand %p1733_p1, %p1727_p7 }
  0xab   : > { %1428 = vmatprep.subr.bf16.mxu1 %v1568_v19 }
  0xad   : > { %991 = vmatpush1.bf16.msra.mxu0 %v1581_v53 }
  0xae   : > { %1429 = vmatpush3.bf16.msra.mxu1 %v1569_v20  ;;  %1029 = vmatprep.subr.bf16.mxu0 %v1586_v54  ;;  %v1589_v20 = vld [vmem:[#allocation8 + $0x2c] ss:$16 sps:$4 sm:$0xff]  }
  0xaf   : > { %1430 = vmatprep.subr.bf16.mxu1 %v1570_v21 }
  0xb2   : > { %1431 = vmatpush3.bf16.msra.mxu1 %v1571_v22 }
  0xb3   : > { %1432 = vmatprep.subr.bf16.mxu1 %v1572_v23  ;;  %v1587_v23 = vld [vmem:[#allocation8 + $0x28] ss:$16 sps:$4 sm:$0xff]  }
  0xb6   : > { %1433 = vmatpush3.bf16.msra.mxu1 %v1573_v24 }
  0xb7   : > { %1434 = vmatprep.subr.bf16.mxu1 %v1574_v25 }
  0xba   : > { %1435 = vmatpush3.bf16.msra.mxu1 %v1575_v26  ;;  %v1376_v26 = vld [vmem:[%s2304_s4] ss:$0 sm:$0xff] }
  0xbb   : > { %1436 = vmatprep.subr.bf16.mxu1 %v1576_v27 }
  0xbe   : > { %1437 = vmatpush3.bf16.msra.mxu1 %v1577_v28 }
 0x173   : > { %v595_v38 = vpop.f32.mrb[0].mxu0  ;;  %v636_v39 = vpop.f32.mrb[0].mxu1 }
 0x174   : > { %v695_v40 = vadd.f32 %v688_v36, %v595_v38  ;;  %v597_v41 = vpop.f32.mrb[1].mxu0  ;;  %v925_v42 = vsel %vm557_vm0, %v636_v39, 0.0  ;;  %v638_v55 = vpop.f32.mrb[1].mxu1 }
 0x175   : > { %v696_v43 = vadd.f32 %v692_v37, %v597_v41  ;;  %926 = vadd.xlane.f32.xlu0 %v925_v42  ;;  %v599_v44 = vpop.f32.mrb[2].mxu0  ;;  %v640_v59 = vpop.f32.mrb[2].mxu1  ;;  %v910_v1 = vadd.f32 %v903_v58, %v638_v55 }
 0x176   : > { %v1374_v45 = vmul.f32 -1.442695, %v695_v40  ;;  %v600_v46 = vpop.f32.mrb[3].mxu0  ;;  %v641_v62 = vpop.f32.mrb[3].mxu1  ;;  %v1113_v59 = vrot.slane %v1108_v56, %v2152_v33 }
 0x177   : > { %v1375_v47 = vmul.f32 -1.442695, %v696_v43  ;;  %v912_v6 = vmax.f32 %v910_v1, -2.3025851 }
 0x178   : > { %1590 = vpow2.f32 %v1374_v45 }
 0x179   : > { %1592 = vpow2.f32 %v1375_v47  ;;  %v914_v11 = vmin.f32 %v912_v6, 0.6931472 }
 0x17b   : > { %v677_v2 = vpop.f32.mrb[4].mxu0 }
 0x17c   : > { %v1450_v4 = vpop.f32.mrb[5].mxu0  ;;  %v911_v7 = vadd.f32 %v907_v3, %v677_v2 }
 0x17d   : > { %v680_v8 = vpop.f32.mrb[6].mxu0 }
 0x17e   : > { %v1451_v10 = vpop.f32.mrb[7].mxu0  ;;  %v913_v12 = vmax.f32 %v911_v7, -2.3025851 }
 0x180   : > { %v915_v13 = vmin.f32 %v913_v12, 0.6931472 }
 0x182   : > { %v1591_v48 = vpop.eup %1590  ;;  %v1415_v14 = vpack.c.bf16 %v915_v13, %v914_v11 }
 0x183   : > { %v1593_v49 = vpop.eup %1592  ;;  %v703_v50 = vadd.f32 1.0, %v1591_v48 }
 0x184   : > { %v704_v52 = vadd.f32 1.0, %v1593_v49  ;;  %924 = vst [vmem:[%s490_s26] sm:$0xff] %v1415_v14  ;;  %v1092_v49 = vld [vmem:[%s2308_s8] sm:$0x3] }
 0x185   : > { %1594 = vrcp.f32 %v703_v50  ;;  %v1101_v54 = vrot.slane %v1092_v49, %v2157_v35 }
 0x186   : > { %1596 = vrcp.f32 %v704_v52  ;;  %v1097_v52 = vrot.slane %v1092_v49, %v2152_v33 }
 0x18f   : > { %v1595_v57 = vpop.eup %1594 }
 0x190   : > { %v1597_v60 = vpop.eup %1596  ;;  %v709_v61 = vmul.f32 %v1595_v57, %v695_v40 }
 0x191   : > { %v710_v63 = vmul.f32 %v1597_v60, %v696_v43 }
 0x192   : > { %v711_v9 = vpack.c.bf16 %v709_v61, %v709_v61  ;;  %v1117_v61 = vrot.slane %v1108_v56, %v2157_v35 }
 0x193   : > { %v712_v5 = vpack.c.bf16 %v710_v63, %v710_v63 }
 0x195   : > { %880 = vmatprep.mubr.bf16.mxu1 %v712_v5 }
 0x196   : > { %881 = vmatmul.mubr.bf16.vlgmr.msra.gmra.mrb[4].mxu1 %v711_v9 }
 0x202   : > { %v927_v15 = vpop.xlane.xlu0 %926 }
 0x203   : > { %v929_v16 = vmul.f32 0.03125, %v927_v15 }
 0x205   : > { %v930_v17 = vsub.f32 %v636_v39, %v929_v16 }
 0x207   : > { %v936_v19 = vpack.c.bf16 %v930_v17, %v930_v17  ;;  %v931_v21 = vmul.f32 %v930_v17, %v930_v17 }
 0x209   : > { %1402 = vmatmul.mubr.msk.bf16.vlgmr.msra.gmra.mrb[8].mxu0 %vm557_vm0, %v936_v19  ;;  %v932_v22 = vsel %vm557_vm0, %v931_v21, 0.0 }
 0x20a   : > { %1030 = vmatpush1.bf16.msra.mxu0 %v1584_v18  ;;  %1061 = vmatprep.mubr.bf16.mxu0 %v1870_v0  ;;  %v1070_v0 = vld [vmem:[%s2307_s7] sm:$0x3] }
 0x20b   : > { %1031 = vmatprep.subr.bf16.mxu0 %v1589_v20  ;;  %933 = vadd.xlane.f32.xlu1 %v932_v22  ;;  %v1075_v34 = vrot.slane %v1070_v0, %v2152_v33  ;;  %v1079_v36 = vrot.slane %v1070_v0, %v2157_v35 }
 0x20e   : > { %1032 = vmatpush1.bf16.msra.mxu0 %v1587_v23 }
 0x211   : > { %1403 = vmatmul.mubr.msk.bf16.vlgmr.msra.gmra.mrb[12].mxu0 %vm557_vm0, %v936_v19 }
 0x269   : > { %v1438_v24 = vpop.f32.mrb[4].mxu1 }
 0x26a   : > { %v1439_v25 = vpop.f32.mrb[5].mxu1 }
 0x26b   : > { %v1440_v27 = vadd.f32 %v1439_v25, %v1438_v24  ;;  %v1441_v28 = vpop.f32.mrb[6].mxu1 }
 0x26c   : > { %v1442_v29 = vpop.f32.mrb[7].mxu1 }
 0x26d   : > { %v883_v30 = vadd.f32 %v1440_v27, %v1376_v26 }
 0x26f   : > { %888 = vmax.xlane.f32.xlu0 %v883_v30 }
 0x298   : > { %v934_v31 = vpop.xlane.xlu1 %933 }
 0x299   : > { %v935_v32 = vmul.f32 0.03125, %v934_v31 }
 0x29b   : > { %v1082_v37 = vadd.f32 %v1075_v34, %v935_v32  ;;  %v1083_v39 = vadd.f32 %v1079_v36, %v935_v32 }
 0x2dc   : > { %v1022_v38 = vpop.f32.mrb[8].mxu0 }
 0x2dd   : > { %v1084_v40 = vadd.f32 %v1082_v37, %v1022_v38  ;;  %v1024_v41 = vpop.f32.mrb[9].mxu0 }
 0x2de   : > { %v1085_v42 = vadd.f32 %v1083_v39, %v1024_v41  ;;  %v1026_v43 = vpop.f32.mrb[10].mxu0 }
 0x2df   : > { %v1086_v44 = vmax.f32 %v1084_v40, 0.0  ;;  %v1027_v45 = vpop.f32.mrb[11].mxu0 }
 0x2e0   : > { %v1087_v46 = vmax.f32 %v1085_v42, 0.0 }
 0x2e1   : > { %v1088_v47 = vadd.f32 1e-05, %v1086_v44 }
 0x2e2   : > { %v1089_v48 = vadd.f32 1e-05, %v1087_v46 }
 0x2e3   : > { %1598 = vrsqrt.f32 %v1088_v47 }
 0x2e4   : > { %1600 = vrsqrt.f32 %v1089_v48  ;;  %v1063_v50 = vpop.f32.mrb[12].mxu0 }
 0x2e5   : > { %v1065_v51 = vpop.f32.mrb[13].mxu0  ;;  %v1104_v57 = vadd.f32 %v1097_v52, %v1063_v50 }
 0x2e6   : > { %v1067_v53 = vpop.f32.mrb[14].mxu0  ;;  %v1105_v58 = vadd.f32 %v1101_v54, %v1065_v51 }
 0x2e7   : > { %v1068_v55 = vpop.f32.mrb[15].mxu0 }
 0x2ed   : > { %v1599_v60 = vpop.eup %1598 }
 0x2ee   : > { %v1601_v62 = vpop.eup %1600  ;;  %v1106_v63 = vmul.f32 %v1599_v60, %v1104_v57 }
 0x2ef   : > { %v1107_v1 = vmul.f32 %v1601_v62, %v1105_v58 }
 0x2f0   : > { %v1120_v2 = vadd.f32 %v1113_v59, %v1106_v63 }
 0x2f1   : > { %v1121_v3 = vadd.f32 %v1117_v61, %v1107_v1 }
 0x2f2   : > { %1602 = vtanh.f32 %v1120_v2 }
 0x2f3   : > { %1604 = vtanh.f32 %v1121_v3 }
 0x2fc   : > { %v1603_v4 = vpop.eup %1602  ;;  %v889_v5 = vpop.xlane.xlu0 %888 }
 0x2fd   : > { %v1605_v6 = vpop.eup %1604  ;;  %v890_v7 = vsub.f32 %v883_v30, %v889_v5 }
 0x2fe   : > { %v1416_v8 = vpack.c.bf16 %v1605_v6, %v1603_v4 }
 0x2ff   : > { %v891_v33 = vmul.f32 1.442695, %v890_v7 }
 0x300   : > { %1132 = vst [vmem:[%s483_s27] sm:$0xff] %v1416_v8 }
 0x301   : > { %1606 = vpow2.f32 %v891_v33 }
 0x30b   : > { %v2196_v35 = vpop.eup %1606 }
 0x30c   : > { %893 = vadd.xlane.f32.xlu1 %v2196_v35 }
 0x30d   : > { %1737 = shalt.err (!%p1734_p4)
}
 0x30e   : > { %s1738_s27 = scalar_lea.hbm %s2207_s17, 128  ;;  %s1742_s15 = scalar_lea.hbm %s2347_s14, 256 }
 0x30f   : > { %p1739_p0 = scmp.ne.s32.totalorder %s2207_s17, %s1738_s27  ;;  %p1743_p11 = scmp.lt.u32.totalorder %s2207_s17, %s2347_s14 }
 0x310   : > { %p1744_p13 = scmp.lt.u32.totalorder %s1742_s15, %s1738_s27  ;;  %p1746_p10 = scmp.lt.u32.totalorder %s1738_s27, %s2207_s17 }
 0x311   : > { %p1740_p9 = pnand %p1739_p0, %p2085_p5 }
 0x312   : > { %p1745_p6 = por %p1744_p13, %p1743_p11 }
 0x313   : > { %p1741_p8 = pneg %p1740_p9 }
 0x314   : > { %p1747_p3 = por %p1746_p10, %p1745_p6 }
 0x316   : > { %p1748_p7 = pnand %p1747_p3, %p1741_p8 }
 0x318   : > { %1751 = shalt.err (!%p1748_p7)
}
 0x319   : > { %1467 = dma.vmem_to_hbm [thread:$0]  (%p2085_p5), %s1172_s16, 128, %s2207_s17, %s2209_s21  }
 0x31a   : > { %s1185_s18 = sshll.u32 %s490_s26, 4  ;;  %s2348_s10 = sld [smem:[#allocation26_spill]]  ;;  %s1186_s18 = int_to_ptr.vmem [resolvable:$true] %s1185_s18 }
 0x31b   : > { %s1752_s15 = scalar_lea.vmem %s1186_s18, 128  ;;  %s1874_s27 = smov [#allocation13]  }
 0x31c   : > { %p1753_p12 = scmp.ne.s32.totalorder %s1186_s18, %s1752_s15  ;;  %s1756_s28 = sshll.u32 %s1874_s27, 4  ;;  %s1757_s28 = int_to_ptr.vmem [resolvable:$false] %s1756_s28 }
 0x31d   : > { %s1758_s0 = scalar_lea.vmem %s1757_s28, 256  ;;  %p1759_p4 = scmp.lt.s32.totalorder %s1186_s18, %s1757_s28 }
 0x31e   : > { %p1754_p2 = pnand %p1753_p12, %p2085_p5  ;;  %p1760_p0 = scmp.lt.s32.totalorder %s1758_s0, %s1752_s15 }
 0x320   : > { %s1183_s30 = scalar_lea.hbm %s2348_s10, %s2201_s13  ;;  %p1755_p1 = pneg %p1754_p2 }
 0x321   : > { %p1761_p9 = por %p1760_p0, %p1759_p4 }
 0x323   : > { %p1762_p8 = pnand %p1761_p9, %p1755_p1 }
 0x325   : > { %1765 = shalt.err (!%p1762_p8)
}
 0x326   : > { %s1766_s26 = scalar_lea.hbm %s1183_s30, 128  ;;  %s1770_s25 = scalar_lea.hbm %s2348_s10, 256 }
 0x327   : > { %p1767_p11 = scmp.ne.s32.totalorder %s1183_s30, %s1766_s26  ;;  %p1771_p10 = scmp.lt.u32.totalorder %s1183_s30, %s2348_s10 }
 0x328   : > { %p1772_p3 = scmp.lt.u32.totalorder %s1770_s25, %s1766_s26  ;;  %p1774_p12 = scmp.lt.u32.totalorder %s1766_s26, %s1183_s30 }
 0x329   : > { %p1768_p13 = pnand %p1767_p11, %p2085_p5 }
 0x32a   : > { %p1773_p7 = por %p1772_p3, %p1771_p10 }
 0x32b   : > { %p1769_p6 = pneg %p1768_p13 }
 0x32c   : > { %p1775_p2 = por %p1774_p12, %p1773_p7 }
 0x32e   : > { %p1776_p1 = pnand %p1775_p2, %p1769_p6 }
 0x330   : > { %1779 = shalt.err (!%p1776_p1)
}
 0x331   : > { %1468 = dma.vmem_to_hbm [thread:$0]  (%p2085_p5), %s1186_s18, 128, %s1183_s30, %s2209_s21  }
 0x332   : > { %s476_s0 = scalar_lea.vmem [#allocation10], %s2168_s1  ;;  %s2349_s28 = sld [smem:[#allocation24_spill]] }
 0x333   : > { %s1157_s15 = sshll.u32 %s476_s0, 4  ;;  %s1134_s17 = scalar_lea.sflag [#allocation4], %s2130_s11  ;;  %s2256_s15 = int_to_ptr.vmem [resolvable:$true] %s1157_s15 }
 0x334   : > { %s1780_s21 = scalar_lea.vmem %s2256_s15, 128  ;;  %s1875_s1 = smov [#allocation10]  }
 0x335   : > { %p1781_p4 = scmp.ne.s32.totalorder %s2256_s15, %s1780_s21  ;;  %s1784_s18 = sshll.u32 %s1875_s1, 4  ;;  %s1785_s18 = int_to_ptr.vmem [resolvable:$false] %s1784_s18 }
 0x336   : > { %s1786_s30 = scalar_lea.vmem %s1785_s18, 256  ;;  %p1787_p8 = scmp.lt.s32.totalorder %s2256_s15, %s1785_s18 }
 0x337   : > { %p1782_p0 = pnand %p1781_p4, %p2085_p5  ;;  %p1788_p11 = scmp.lt.s32.totalorder %s1786_s30, %s1780_s21 }
 0x338   : > { %s2254_s26 = scalar_lea.hbm %s2349_s28, %s2201_s13 }
 0x339   : > { %p1783_p9 = pneg %p1782_p0  ;;  %p1789_p13 = por %p1788_p11, %p1787_p8 }
 0x33b   : > { %p1790_p6 = pnand %p1789_p13, %p1783_p9 }
 0x399   : > { %v894_v9 = vpop.xlane.xlu1 %893 }
 0x39a   : > { %1608 = vrcp.f32 %v894_v9 }
 0x3a4   : > { %v1609_v10 = vpop.eup %1608 }
 0x3a5   : > { %v896_v11 = vmul.f32 %v1609_v10, %v2196_v35 }
 0x3a7   : > { %897 = vst [vmem:[%s476_s0] sm:$0xff] %v896_v11 }
 0x3a8   : > { %1793 = shalt.err (!%p1790_p6)
}
 0x3a9   : > { %s1794_s11 = scalar_lea.hbm %s2254_s26, 128  ;;  %s1798_s25 = scalar_lea.hbm %s2349_s28, 256 }
 0x3aa   : > { %p1795_p10 = scmp.ne.s32.totalorder %s2254_s26, %s1794_s11  ;;  %p1799_p12 = scmp.lt.u32.totalorder %s2254_s26, %s2349_s28 }
 0x3ab   : > { %p1800_p2 = scmp.lt.u32.totalorder %s1798_s25, %s1794_s11  ;;  %p1802_p4 = scmp.lt.u32.totalorder %s1794_s11, %s2254_s26 }
 0x3ac   : > { %p1796_p3 = pnand %p1795_p10, %p2085_p5 }
 0x3ad   : > { %p1801_p1 = por %p1800_p2, %p1799_p12 }
 0x3ae   : > { %p1797_p7 = pneg %p1796_p3 }
 0x3af   : > { %p1803_p0 = por %p1802_p4, %p1801_p1 }
 0x3b1   : > { %p1804_p9 = pnand %p1803_p0, %p1797_p7 }
 0x3b3   : > { %1807 = shalt.err (!%p1804_p9)
}
 0x3b4   : > { %1466 = dma.vmem_to_hbm [thread:$0]  (%p2085_p5), %s2256_s15, 128, %s2254_s26, %s1134_s17  }
 0x3b5 PF: > { %s2350_s2 = sld [smem:[#allocation19_spill]]  ;;  %s2351_s27 = sld [smem:[#allocation20_spill]] }
 0x3b6   : > { %p2353_p11 = scmp.ge.s32.totalorder %s1858_s24, 2 }
 0x3bb   : > { %s1197_s21 = sand.u32 1, %s2350_s2   ;;  %p2352_p8 = scmp.ne.s32.totalorder %s2351_s27, 0 }
 0x3bc   : > { %s1198_s1 = scalar_lea.sflag [#allocation4], %s1197_s21 }
 0x3bd   : > { %p1487_p13 = pnand %p2353_p11, %p2352_p8 }
 0x3bf   : > { %1837 = dma.done.wait (!%p1487_p13), %s1198_s1, 128  }
 0x3c0   : > { %1839 = vsyncadd (!%p1487_p13), %s1198_s1, 4294967168  ;;  %s2354_s18 = sadd.s32 4294967294, %s1858_s24  }
 0x3c1   : > { %s1206_s30 = sand.u32 1, %s2354_s18  }
 0x3c2   : > { %s1207_s11 = scalar_lea.sflag [#allocation12], %s1206_s30 }
 0x3c3   : > { %1841 = dma.done.wait (!%p1487_p13), %s1207_s11, 256  }
 0x3c4   : > { %1843 = vsyncadd (!%p1487_p13), %s1207_s11, 4294967040  ;;  %p31_p5 = scmp.ge.s32.totalorder %s2071_s12, 4   ;;  %s2355_s21 = smov %s1850_s22 }
 0x3c5   : > { %s2356_s22 = smov %s1854_s23  ;;  %s2357_s23 = smov %s2081_s19 }
 0x3c6   : > { %s2358_s24 = smov %s2071_s12  ;;  %33 = sbr.rel (!%p31_p5) target bundleno = 16 (0x10), region = 149 }
 0x3cd   :  { %1221 = vsyncpa [#allocation3], 1 }
 0x3ce   :  { %1223 = vsyncpa [#allocation3 + $0x1], 1 }
 0x3cf   :  { %1224 = vsyncpa [#allocation6], 1 }
 0x3d0   :  { %1225 = vsyncpa [#allocation9], 1 }
 0x3d1   :  { %1226 = vsyncpa [#allocation4], 1 }
 0x3d2   :  { %1228 = vsyncpa [#allocation4 + $0x1], 1 }
 0x3d3   :  { %1229 = vsyncpa [#allocation12], 1 }
 0x3d4   :  { %1231 = vsyncpa [#allocation12 + $0x1], 1 }

</bundles_post_ra>
